<compile_context>
chip_gen: v5e
topology: v5e:2x2
jax: 0.10.0
libtpu: 0.0.40
codegen_flags: <defaults>
</compile_context>

<pallas_src>
import jax
import jax.numpy as jnp
from jax import lax
from jax.experimental import pallas as pl
from jax.experimental.pallas import tpu as pltpu

NEG_SLOPE = 0.01   # nn.LeakyReLU / F.leaky_relu default
LANE = 128         # TPU lane width; weight/output widths padded to this


def _lrelu(v):
    # max(v, a*v) is one VALU op cheaper than where(v>0, v, a*v).
    return jnp.maximum(v, NEG_SLOPE * v)


def _round_up(v, m):
    return (v + m - 1) // m * m


# --------------------------------------------------------------------------- #
# Host-side packing: lane-dense f32 weight slabs (128-multiple widths).
# --------------------------------------------------------------------------- #
def pack_params(params):
    in_c, H = params["wsh"].shape
    out_c = params["m1w2"].shape[1]
    Hp = _round_up(H, LANE)           # lane-dense hidden width (h columns)
    H2p = _round_up(2 * H, LANE)      # fused conv1||conv2 width
    Op2 = _round_up(2 * out_c, LANE)  # fused p1||p2 output width
    L2 = max(H2p, Op2)

    # pass-1 weights: shared conv (padded cols stay exactly 0 through lrelu)
    wsh = jnp.zeros((in_c, Hp), jnp.float32).at[:, :H].set(params["wsh"])
    bsh = jnp.zeros((8, Hp), jnp.float32).at[0, :H].set(params["bsh"].reshape(-1))

    # pass-2 slab: [w1|w2] ; blockdiag(m1w1,m2w1) ; blockdiag(m1w2,m2w2)
    w12 = jnp.zeros((Hp, L2), jnp.float32)
    w12 = w12.at[:H, :H].set(params["w1"]).at[:H, H:2 * H].set(params["w2"])
    wm1 = jnp.zeros((H2p, L2), jnp.float32)
    wm1 = wm1.at[:H, :H].set(params["m1w1"]).at[H:2 * H, H:2 * H].set(params["m2w1"])
    wm2 = jnp.zeros((H2p, L2), jnp.float32)
    wm2 = wm2.at[:H, :out_c].set(params["m1w2"]).at[H:2 * H, out_c:2 * out_c].set(params["m2w2"])
    wslab = jnp.concatenate([w12, wm1, wm2], axis=0)        # (Hp + 2*H2p, L2)

    bslab = jnp.zeros((8, L2), jnp.float32)
    bslab = bslab.at[0, :H].set(params["b1"].reshape(-1)).at[0, H:2 * H].set(params["b2"].reshape(-1))
    bslab = bslab.at[1, :H].set(params["m1b1"].reshape(-1)).at[1, H:2 * H].set(params["m2b1"].reshape(-1))
    bslab = bslab.at[2, :out_c].set(params["m1b2"].reshape(-1)).at[2, out_c:2 * out_c].set(params["m2b2"].reshape(-1))

    dims = dict(in_c=in_c, hid=H, out_c=out_c, Hp=Hp, H2p=H2p, Op2=Op2, L2=L2)
    return wsh, bsh, wslab, bslab, dims


# --------------------------------------------------------------------------- #
# Raw A+I adjacency (PyG scatter-add semantics) built directly in bf16,
# plus D^{-1/2} scaling vector.  Extra padded rows/cols are zero (inert).
# --------------------------------------------------------------------------- #
def gcn_adjacency_and_scale(edge_index, num_nodes, padded_nodes):
    src, dst = edge_index[0], edge_index[1]
    a = jnp.zeros((padded_nodes, padded_nodes), jnp.bfloat16)
    a = a.at[dst, src].add(1.0)                   # message flows src -> dst
    diag = jnp.arange(num_nodes)
    a = a.at[diag, diag].add(1.0)                 # self loops (real nodes only)
    deg = jnp.zeros((padded_nodes,), jnp.float32).at[dst].add(1.0)
    deg = deg.at[diag].add(1.0)
    dis = jnp.where(deg > 0, lax.rsqrt(deg), 0.0)
    return a, dis.reshape(padded_nodes, 1)


# --------------------------------------------------------------------------- #
# Pass 1: h = leaky_relu( D^-1/2 (A+I) D^-1/2 (X Wsh) + bsh )
# --------------------------------------------------------------------------- #
def make_shared_conv_kernel(Hp):
    def kernel(a_ref, xk_ref, disk_ref, disr_ref, w_ref, b_ref, h_ref, acc_ref):
        k = pl.program_id(1)

        @pl.when(k == 0)
        def _init():
            acc_ref[...] = jnp.zeros_like(acc_ref)

        # Per-K-tile transformed features: dis_k * (X_k @ Wsh)  (f32)
        xw = jnp.dot(xk_ref[...], w_ref[...], preferred_element_type=jnp.float32)
        xw = xw * disk_ref[...]
        # Row-block aggregation on the MXU (bf16 operands, f32 accumulation).
        acc_ref[...] += jnp.dot(a_ref[...], xw.astype(jnp.bfloat16),
                                preferred_element_type=jnp.float32)

        @pl.when(k == pl.num_programs(1) - 1)
        def _finalize():
            h_ref[...] = _lrelu(acc_ref[...] * disr_ref[...] + b_ref[0:1, :])

    return kernel


# --------------------------------------------------------------------------- #
# Pass 2: [p1|p2] = blockdiag-MLP( leaky_relu( conv1||conv2 (h) ) )
# --------------------------------------------------------------------------- #
def make_heads_kernel(Hp, H2p, Op2):
    r12, rm1, rm2 = 0, Hp, Hp + H2p

    def kernel(a_ref, hk_ref, disk_ref, disr_ref, w_ref, b_ref, out_ref, acc_ref):
        k = pl.program_id(1)

        @pl.when(k == 0)
        def _init():
            acc_ref[...] = jnp.zeros_like(acc_ref)

        w12 = w_ref[r12:r12 + Hp, :H2p]            # [w1 | w2], 128-aligned ref slice
        hw = jnp.dot(hk_ref[...], w12, preferred_element_type=jnp.float32)
        hw = hw * disk_ref[...]
        acc_ref[...] += jnp.dot(a_ref[...], hw.astype(jnp.bfloat16),
                                preferred_element_type=jnp.float32)

        @pl.when(k == pl.num_programs(1) - 1)
        def _finalize():
            h12 = _lrelu(acc_ref[...] * disr_ref[...] + b_ref[0:1, :H2p])
            wm1 = w_ref[rm1:rm1 + H2p, :H2p]       # blockdiag(m1w1, m2w1)
            z = _lrelu(jnp.dot(h12, wm1, preferred_element_type=jnp.float32)
                       + b_ref[1:2, :H2p])
            wm2 = w_ref[rm2:rm2 + H2p, :Op2]       # blockdiag(m1w2, m2w2)
            out_ref[...] = (jnp.dot(z, wm2, preferred_element_type=jnp.float32)
                            + b_ref[2:3, :Op2])

    return kernel


# --------------------------------------------------------------------------- #
# Wrapper.
# --------------------------------------------------------------------------- #
def variational_gcn_mlp_encoder(x, edge_index, params, *, tm=128, tk=128):
    n, in_c = x.shape
    wsh, bsh, wslab, bslab, d = pack_params(params)
    out_c = d["out_c"]
    Hp, H2p, Op2 = d["Hp"], d["H2p"], d["Op2"]

    # Pad node count so both the row (TM) and reduction (TK) tilings divide it.
    # TODO(synk): per-generation tile budgets -- on v7x (64 MiB VMEM) keep
    # 2*TM*TK*2B (double-buffered A) + residents <= ~24-28 MiB; on v5e/v6e the
    # 128 MiB budget allows much larger TK.
    npad = _round_up(n, max(tm, tk))
    a, dis = gcn_adjacency_and_scale(edge_index, n, npad)
    xp = jnp.zeros((npad, in_c), jnp.float32).at[:n].set(x.astype(jnp.float32))

    grid = (npad // tm, npad // tk)
    nrow = grid[0]
    cparams = pltpu.CompilerParams(
        dimension_semantics=("parallel", "arbitrary"),
        vmem_limit_bytes=32 << 20)

    def const_spec(arr):
        nd = arr.ndim
        return pl.BlockSpec(arr.shape, lambda i, k: (0,) * nd)

    a_spec = pl.BlockSpec((tm, tk), lambda i, k: (i, k))
    disk_spec = pl.BlockSpec((tk, 1), lambda i, k: (k, 0))
    disr_spec = pl.BlockSpec((tm, 1), lambda i, k: (i, 0))

    # ---- pass 1: shared conv + LeakyReLU -> lane-dense h (npad, Hp) ----
    cost1 = pl.CostEstimate(
        flops=int(2 * npad * npad * Hp + 2 * nrow * npad * in_c * Hp),
        transcendentals=0,
        bytes_accessed=int(npad * npad * 2 + nrow * npad * in_c * 4 + npad * Hp * 4))
    h = pl.pallas_call(
        make_shared_conv_kernel(Hp),
        out_shape=jax.ShapeDtypeStruct((npad, Hp), jnp.float32),
        grid=grid,
        in_specs=[a_spec,
                  pl.BlockSpec((tk, in_c), lambda i, k: (k, 0)),
                  disk_spec, disr_spec,
                  const_spec(wsh), const_spec(bsh)],
        out_specs=pl.BlockSpec((tm, Hp), lambda i, k: (i, 0)),
        scratch_shapes=[pltpu.VMEM((tm, Hp), jnp.float32)],
        compiler_params=cparams,
        cost_estimate=cost1,
    )(a, xp, dis, dis, wsh, bsh)

    # ---- pass 2: fused conv1||conv2 + block-diag MLP heads -> (npad, Op2) ----
    cost2 = pl.CostEstimate(
        flops=int(2 * npad * npad * H2p + 2 * nrow * npad * Hp * H2p
                  + 2 * npad * (H2p * H2p + H2p * Op2)),
        transcendentals=0,
        bytes_accessed=int(npad * npad * 2 + nrow * npad * Hp * 4 + npad * Op2 * 4))
    out = pl.pallas_call(
        make_heads_kernel(Hp, H2p, Op2),
        out_shape=jax.ShapeDtypeStruct((npad, Op2), jnp.float32),
        grid=grid,
        in_specs=[a_spec,
                  pl.BlockSpec((tk, Hp), lambda i, k: (k, 0)),
                  disk_spec, disr_spec,
                  const_spec(wslab), const_spec(bslab)],
        out_specs=pl.BlockSpec((tm, Op2), lambda i, k: (i, 0)),
        scratch_shapes=[pltpu.VMEM((tm, H2p), jnp.float32)],
        compiler_params=cparams,
        cost_estimate=cost2,
    )(a, h, dis, dis, wslab, bslab)

    return out[:n, :out_c], out[:n, out_c:2 * out_c]


# --------------------------------------------------------------------------- #
# Parameters / reference.
# --------------------------------------------------------------------------- #
def init_params(key, in_channels, hidden_channels, out_channels):
    ks = jax.random.split(key, 16)
    s = 0.1

    def w(k, shape):
        return (s * jax.random.normal(k, shape)).astype(jnp.float32)

    return {
        "wsh": w(ks[0], (in_channels, hidden_channels)),
        "bsh": w(ks[1], (1, hidden_channels)),
        "w1": w(ks[2], (hidden_channels, hidden_channels)),
        "b1": w(ks[3], (1, hidden_channels)),
        "w2": w(ks[4], (hidden_channels, hidden_channels)),
        "b2": w(ks[5], (1, hidden_channels)),
        "m1w1": w(ks[6], (hidden_channels, hidden_channels)),
        "m1b1": w(ks[7], (1, hidden_channels)),
        "m1w2": w(ks[8], (hidden_channels, out_channels)),
        "m1b2": w(ks[9], (1, out_channels)),
        "m2w1": w(ks[10], (hidden_channels, hidden_channels)),
        "m2b1": w(ks[11], (1, hidden_channels)),
        "m2w2": w(ks[12], (hidden_channels, out_channels)),
        "m2b2": w(ks[13], (1, out_channels)),
    }


def reference_forward(x, edge_index, params):
    """Pure-JAX f32 reference with identical semantics."""
    n = x.shape[0]
    src, dst = edge_index[0], edge_index[1]
    a = jnp.zeros((n, n), jnp.float32).at[dst, src].add(1.0)
    a = a + jnp.eye(n, dtype=jnp.float32)
    deg = a.sum(axis=1)
    dis = jnp.where(deg > 0, 1.0 / jnp.sqrt(deg), 0.0).reshape(n, 1)
    a_norm = dis * a * dis.reshape(1, n)

    def lrelu(v):
        return jnp.where(v > 0, v, NEG_SLOPE * v)

    def gcn(h, w, b):
        return a_norm @ (h @ w) + b

    def mlp(h, w1, b1, w2, b2):
        return lrelu(h @ w1 + b1) @ w2 + b2

    h = lrelu(gcn(x, params["wsh"], params["bsh"]))
    p1 = mlp(lrelu(gcn(h, params["w1"], params["b1"])),
             params["m1w1"], params["m1b1"], params["m1w2"], params["m1b2"])
    p2 = mlp(lrelu(gcn(h, params["w2"], params["b2"])),
             params["m2w1"], params["m2b1"], params["m2w2"], params["m2b2"])
    return p1, p2


if __name__ == "__main__":
    N = 256             # number of graph nodes (multiple of the 128 tile)
    IN_C = 8            # in_channels
    HID = 32            # hidden_channels
    OUT_C = 16          # out_channels

    key = jax.random.PRNGKey(0)
    k_x, k_p = jax.random.split(key)

    x = jax.random.normal(k_x, (N, IN_C), dtype=jnp.float32)

    # Deterministic ring graph, both directions: edge_index shape (2, 2N).
    idx = jnp.arange(N)
    src = jnp.concatenate([idx, (idx + 1) % N])
    dst = jnp.concatenate([(idx + 1) % N, idx])
    edge_index = jnp.stack([src, dst], axis=0).astype(jnp.int32)

    params = init_params(k_p, IN_C, HID, OUT_C)

    p1, p2 = variational_gcn_mlp_encoder(x, edge_index, params)
    jax.block_until_ready((p1, p2))

    r1, r2 = reference_forward(x, edge_index, params)
    assert p1.shape == (N, OUT_C) and p2.shape == (N, OUT_C)
    # Only rounding point: the aggregation operand dis*(X@W) is cast to bf16.
    assert jnp.allclose(p1, r1, rtol=2e-2, atol=2e-2), float(jnp.max(jnp.abs(p1 - r1)))
    assert jnp.allclose(p2, r2, rtol=2e-2, atol=2e-2), float(jnp.max(jnp.abs(p2 - r2)))

    print("KERNEL_OK")
</pallas_src>

<mosaic_0001>
module attributes {stable_mosaic.version = 11 : i64} {
  func.func @kernel(%arg0: i32, %arg1: i32, %arg2: memref<128x128xbf16, #tpu.memory_space<vmem>>, %arg3: memref<128x8xf32, #tpu.memory_space<vmem>>, %arg4: memref<128x1xf32, #tpu.memory_space<vmem>>, %arg5: memref<128x1xf32, #tpu.memory_space<vmem>>, %arg6: memref<8x128xf32, #tpu.memory_space<vmem>>, %arg7: memref<8x128xf32, #tpu.memory_space<vmem>>, %arg8: memref<128x128xf32, #tpu.memory_space<vmem>>, %arg9: memref<128x128xf32, #tpu.memory_space<vmem>>) attributes {dimension_semantics = [#tpu.dimension_semantics<parallel>, #tpu.dimension_semantics<arbitrary>], iteration_bounds = array<i64: 2, 2>, scalar_prefetch = 0 : i64, scratch_operands = 1 : i64, tpu.core_type = #tpu.core_type<tc>, window_params = [{transform_indices = @transform_0, window_bounds = array<i64: 128, 128>}, {transform_indices = @transform_1, window_bounds = array<i64: 128, 8>}, {transform_indices = @transform_2, window_bounds = array<i64: 128, 1>}, {transform_indices = @transform_3, window_bounds = array<i64: 128, 1>}, {pipeline_mode = #tpu.pipeline_mode<synchronous>, transform_indices = @transform_4, window_bounds = array<i64: 8, 128>}, {pipeline_mode = #tpu.pipeline_mode<synchronous>, transform_indices = @transform_5, window_bounds = array<i64: 8, 128>}, {transform_indices = @transform_6, window_bounds = array<i64: 128, 128>}]} {
    %c0_i32 = arith.constant 0 : i32
    %0 = arith.cmpi eq, %arg1, %c0_i32 : i32
    %1 = arith.extui %0 : i1 to i32
    %c0_i32_0 = arith.constant 0 : i32
    %2 = arith.cmpi ne, %1, %c0_i32_0 : i32
    scf.if %2 {
      %cst_14 = arith.constant 0.000000e+00 : f32
      %18 = vector.broadcast %cst_14 : f32 to vector<128x128xf32>
      %c0_15 = arith.constant 0 : index
      %c0_16 = arith.constant 0 : index
      %19 = vector.load %arg9[%c0_15, %c0_16] : memref<128x128xf32, #tpu.memory_space<vmem>>, vector<128x128xf32>
      tpu.vector_store %arg9[%c0_15, %c0_16], %18 {strides = array<i32>} : memref<128x128xf32, #tpu.memory_space<vmem>>, vector<128x128xf32>,
    } else {
    }
    %c0 = arith.constant 0 : index
    %c0_1 = arith.constant 0 : index
    %3 = vector.load %arg3[%c0, %c0_1] : memref<128x8xf32, #tpu.memory_space<vmem>>, vector<128x8xf32>
    %c0_2 = arith.constant 0 : index
    %c0_3 = arith.constant 0 : index
    %4 = vector.load %arg6[%c0_2, %c0_3] : memref<8x128xf32, #tpu.memory_space<vmem>>, vector<8x128xf32>
    %cst = arith.constant dense<0.000000e+00> : vector<128x128xf32>
    %5 = tpu.matmul %3, %4, %cst {dimension_numbers = #tpu.dot_dimension_numbers<[1], [0], [0], [1], [0, 0, 1, 1], [], []>} : vector<128x8xf32>, vector<8x128xf32>, vector<128x128xf32> -> vector<128x128xf32>
    %c0_4 = arith.constant 0 : index
    %c0_5 = arith.constant 0 : index
    %6 = vector.load %arg4[%c0_4, %c0_5] : memref<128x1xf32, #tpu.memory_space<vmem>>, vector<128x1xf32>
    %7 = vector.broadcast %6 : vector<128x1xf32> to vector<128x128xf32>
    %8 = arith.mulf %5, %7 : vector<128x128xf32>
    %c0_6 = arith.constant 0 : index
    %c0_7 = arith.constant 0 : index
    %9 = vector.load %arg9[%c0_6, %c0_7] : memref<128x128xf32, #tpu.memory_space<vmem>>, vector<128x128xf32>
    %c0_8 = arith.constant 0 : index
    %c0_9 = arith.constant 0 : index
    %10 = vector.load %arg2[%c0_8, %c0_9] : memref<128x128xbf16, #tpu.memory_space<vmem>>, vector<128x128xbf16>
    %11 = arith.truncf %8 : vector<128x128xf32> to vector<128x128xbf16>
    %cst_10 = arith.constant dense<0.000000e+00> : vector<128x128xf32>
    %12 = tpu.matmul %10, %11, %cst_10 {dimension_numbers = #tpu.dot_dimension_numbers<[1], [0], [0], [1], [0, 0, 1, 1], [], []>} : vector<128x128xbf16>, vector<128x128xbf16>, vector<128x128xf32> -> vector<128x128xf32>
    %13 = arith.addf %9, %12 : vector<128x128xf32>
    %c0_11 = arith.constant 0 : index
    %c0_12 = arith.constant 0 : index
    %14 = vector.load %arg9[%c0_11, %c0_12] : memref<128x128xf32, #tpu.memory_space<vmem>>, vector<128x128xf32>
    tpu.vector_store %arg9[%c0_11, %c0_12], %13 {strides = array<i32>} : memref<128x128xf32, #tpu.memory_space<vmem>>, vector<128x128xf32>,
    %c1_i32 = arith.constant 1 : i32
    %15 = arith.cmpi eq, %arg1, %c1_i32 : i32
    %16 = arith.extui %15 : i1 to i32
    %c0_i32_13 = arith.constant 0 : i32
    %17 = arith.cmpi ne, %16, %c0_i32_13 : i32
    scf.if %17 {
      %c0_14 = arith.constant 0 : index
      %c0_15 = arith.constant 0 : index
      %18 = vector.load %arg9[%c0_14, %c0_15] : memref<128x128xf32, #tpu.memory_space<vmem>>, vector<128x128xf32>
      %c0_16 = arith.constant 0 : index
      %c0_17 = arith.constant 0 : index
      %19 = vector.load %arg5[%c0_16, %c0_17] : memref<128x1xf32, #tpu.memory_space<vmem>>, vector<128x1xf32>
      %20 = vector.broadcast %19 : vector<128x1xf32> to vector<128x128xf32>
      %21 = arith.mulf %18, %20 : vector<128x128xf32>
      %c0_18 = arith.constant 0 : index
      %c0_19 = arith.constant 0 : index
      %22 = vector.load %arg7[%c0_18, %c0_19] : memref<8x128xf32, #tpu.memory_space<vmem>>, vector<1x128xf32>
      %23 = vector.broadcast %22 : vector<1x128xf32> to vector<128x128xf32>
      %24 = arith.addf %21, %23 : vector<128x128xf32>
      %cst_20 = arith.constant 0.00999999977 : f32
      %25 = vector.broadcast %cst_20 : f32 to vector<128x128xf32>
      %26 = arith.mulf %25, %24 : vector<128x128xf32>
      %27 = arith.maximumf %24, %26 : vector<128x128xf32>
      %c0_21 = arith.constant 0 : index
      %c0_22 = arith.constant 0 : index
      %28 = vector.load %arg8[%c0_21, %c0_22] : memref<128x128xf32, #tpu.memory_space<vmem>>, vector<128x128xf32>
      tpu.vector_store %arg8[%c0_21, %c0_22], %27 {strides = array<i32>} : memref<128x128xf32, #tpu.memory_space<vmem>>, vector<128x128xf32>,
    } else {
    }
    return
  }
  func.func @transform_0(%arg0: i32, %arg1: i32) -> (i32, i32) {
    %c0_i32 = arith.constant 0 : i32
    return %arg0, %arg1 : i32, i32
  }
  func.func @transform_1(%arg0: i32, %arg1: i32) -> (i32, i32) {
    %c0_i32 = arith.constant 0 : i32
    %c0_i32_0 = arith.constant 0 : i32
    return %arg1, %c0_i32 : i32, i32
  }
  func.func @transform_2(%arg0: i32, %arg1: i32) -> (i32, i32) {
    %c0_i32 = arith.constant 0 : i32
    %c0_i32_0 = arith.constant 0 : i32
    return %arg1, %c0_i32 : i32, i32
  }
  func.func @transform_3(%arg0: i32, %arg1: i32) -> (i32, i32) {
    %c0_i32 = arith.constant 0 : i32
    %c0_i32_0 = arith.constant 0 : i32
    return %arg0, %c0_i32 : i32, i32
  }
  func.func @transform_4(%arg0: i32, %arg1: i32) -> (i32, i32) {
    %c0_i32 = arith.constant 0 : i32
    %c0_i32_0 = arith.constant 0 : i32
    %c0_i32_1 = arith.constant 0 : i32
    return %c0_i32, %c0_i32_0 : i32, i32
  }
  func.func @transform_5(%arg0: i32, %arg1: i32) -> (i32, i32) {
    %c0_i32 = arith.constant 0 : i32
    %c0_i32_0 = arith.constant 0 : i32
    %c0_i32_1 = arith.constant 0 : i32
    return %c0_i32, %c0_i32_0 : i32, i32
  }
  func.func @transform_6(%arg0: i32, %arg1: i32) -> (i32, i32) {
    %c0_i32 = arith.constant 0 : i32
    %c0_i32_0 = arith.constant 0 : i32
    return %arg0, %c0_i32 : i32, i32
  }
}

</mosaic_0001>

<bundles_post_ra>
// kernel: tpu_custom_call.1
= control target key start
LH: loop header
LB: loop body
LE: loop exit
PB: predicated region body
PF: predicated region fallthrough
CT: control target
= control target key end

     0   :  { %s1860_s0 = inlined_call_operand.vmem [shape: bf16[256,256], index: 0, kind: input, shape index: {}]   ;;  %s1861_s1 = inlined_call_operand.vmem [shape: f32[256,8], index: 1, kind: input, shape index: {}]   ;;  %s1862_s2 = inlined_call_operand.vmem [shape: f32[256,1], index: 2, kind: input, shape index: {}]   ;;  %s1863_s3 = inlined_call_operand.vmem [shape: f32[256,1], index: 3, kind: input, shape index: {}]   ;;  %s1864_s4 = inlined_call_operand.vmem [shape: f32[8,128], index: 4, kind: input, shape index: {}]   ;;  %s1865_s5 = inlined_call_operand.vmem [shape: f32[8,128], index: 5, kind: input, shape index: {}]   ;;  %s1866_s6 = inlined_call_operand.hbm [shape: f32[256,128], index: 6, kind: output, shape index: {}]  }
   0x1   :  { %1873 = sst [smem:[#allocation14_spill]] %s1860_s0 }
   0x2   :  { %11 = vsyncpa [#allocation5], 0 }
   0x3   :  { %13 = vsyncpa [#allocation5 + $0x1], 0  ;;  %s1551_s21 = smov 0   ;;  %s1553_s22 = smov 0  }
   0x4   :  { %s1555_s23 = smov 0   ;;  %s1557_s24 = smov 0  }
   0x5   :  { %s1559_s25 = smov 0   ;;  %s1561_s26 = smov 0  }
   0x6   :  { %s1563_s27 = smov 0   ;;  %s1565_s28 = smov 0  }
   0x7   :  { %s1567_s29 = smov 0   ;;  %s1569_s30 = smov 0  }
   0x8 LB: > { %1874 = sst [smem:[#allocation7_spill]] %s1489_s25  ;;  %s1201_s7 = sadd.s32 4294967295, %s1509_s30   ;;  %s1509_s30 = sphi %s1569_s30, %s19_s30   ;;  %s1505_s29 = sphi %s1567_s29, %s1896_s29   ;;  %s1501_s28 = sphi %s1565_s28, %s1891_s28   ;;  %s1497_s27 = sphi %s1563_s27, %s1890_s27   ;;  %s1493_s26 = sphi %s1561_s26, %s1889_s26   ;;  %s1489_s25 = sphi %s1559_s25, %s1888_s25   ;;  %s1485_s24 = sphi %s1557_s24, %s1887_s24   ;;  %s1481_s23 = sphi %s1555_s23, %s1895_s23   ;;  %s1477_s22 = sphi %s1553_s22, %s1894_s22   ;;  %s1473_s21 = sphi %s1551_s21, %s1893_s21  }
   0x9   : > { %1875 = sst [smem:[#allocation8_spill]] %s1501_s28  ;;  %s1202_s8 = sadd.s32 4294967294, %s1509_s30  }
   0xa   : > { %1876 = sst [smem:[#allocation9_spill]] %s1505_s29  ;;  %s28_s9 = sadd.s32 1, %s1501_s28 }
   0xb   : > { %s31_s10 = sadd.s32 1, %s1505_s29  ;;  %p29_p0 = scmp.ge.s32.totalorder %s28_s9, 2 }
   0xc   : > { %s40_s11 = sadd.s32 1, %s1489_s25  ;;  %p47_p1 = scmp.ne.s32.totalorder %s1489_s25, %s1485_s24 }
   0xd   : > { %p48_p2 = scmp.eq.s32.totalorder %s1509_s30, 0  ;;  %s1898_s9 = smov (%p29_p0, %s28_s9), 0 }
   0xe   : > { %1877 = sst [smem:[#allocation10_spill]] %s1898_s9  ;;  %s1900_s10 = smov (!%p29_p0, %s31_s10), %s1505_s29 }
   0xf   : > { %s36_s12 = ssub.s32 %s1501_s28, %s1898_s9  ;;  %p1614_p3 = por %p48_p2, %p47_p1 }
  0x10   : > { %p33_p4 = scmp.ge.s32.totalorder %s1900_s10, 2  ;;  %s186_s14 = sadd.s32 1, %s1481_s23 }
  0x11   : > { %p196_p5 = scmp.ne.s32.totalorder %s1481_s23, %s1477_s22  ;;  %p197_p6 = scmp.eq.s32.totalorder %s1201_s7, 3 }
  0x12   : > { %s1902_s10 = smov (%p33_p4, %s1900_s10), 0  ;;  %p202_p8 = scmp.ne.s32.totalorder %s1477_s22, %s1473_s21 }
  0x13   : > { %1879 = sst [smem:[#allocation11_spill]] %s1902_s10  ;;  %p1623_p7 = por %p197_p6, %p196_p5 }
  0x14   : > { %s35_s16 = ssub.s32 %s1505_s29, %s1902_s10  ;;  %p203_p9 = scmp.eq.s32.totalorder %s1202_s8, 3 }
  0x15   : > { %s37_s17 = sor.u32 %s36_s12, %s35_s16  ;;  %p184_p10 = scmp.eq.s32.totalorder %s35_s16, 0 }
  0x16   : > { %p38_p11 = scmp.eq.s32.totalorder %s37_s17, 0  ;;  %p1631_p12 = por %p203_p9, %p202_p8 }
  0x17   : > { %s1636_s19 = scalar_select %p184_p10, %s1481_s23, %s186_s14  }
  0x18   : > { %s1639_s20 = scalar_select %p38_p11, %s1489_s25, %s40_s11  }
  0x19   : > { %1882 = sst [smem:[#allocation12_spill]] %s1636_s19  ;;  %p1204_p13 = scmp.ge.s32.totalorder %s1509_s30, 4 }
  0x1a   : > { %1883 = sst [smem:[#allocation13_spill]] %s1639_s20 }
  0x1b   : > { %225 = sbr.rel (%p1204_p13) target bundleno = 58 (0x3a), region = 24 }
  0x20   : > { %228 = sbr.rel (!%p1614_p3) target bundleno = 58 (0x3a), region = 28  ;;  %s230_s7 = sand.u32 (%p1614_p3), 1, %s1489_s25  }
  0x21   : > { %s1273_s8 = sshll.u32 (%p1614_p3), %s1505_s29, 5  ;;  %s1205_s12 = sshll.u32 (%p1614_p3), %s230_s7, 6 }
  0x22   : > { %s235_s16 = sadd.s32 (%p1614_p3), %s1501_s28, %s1273_s8  ;;  %s1884_s0 = sld [smem:[#allocation14_spill]] (%p1614_p3) }
  0x23   : > { %s1208_s17 = sshll.u32 (%p1614_p3), %s235_s16, 2  ;;  %s232_s11 = scalar_lea.vmem (%p1614_p3), [#allocation3], %s1205_s12 }
  0x28   : > { %s1650_s14 = scalar_lea.vmem %s1884_s0, %s1208_s17 }
  0x29   : > { %v254_v0 = vld [vmem:[%s1650_s14] sm:$0xf]  ;;  %v256_v1 = vld [vmem:[%s1650_s14 + $0x8] sm:$0xf]  ;;  %v258_v2 = vld [vmem:[%s1650_s14 + $0x10] sm:$0xf] }
  0x2a   : > { %255 = vst [vmem:[%s232_s11] sm:$0xf] %v254_v0  ;;  %v260_v3 = vld [vmem:[%s1650_s14 + $0x18] sm:$0xf]  ;;  %v262_v4 = vld [vmem:[%s1650_s14 + $0x20] sm:$0xf] }
  0x2b   : > { %257 = vst [vmem:[%s232_s11 + $0x4] sm:$0xf] %v256_v1  ;;  %v264_v5 = vld [vmem:[%s1650_s14 + $0x28] sm:$0xf]  ;;  %v266_v6 = vld [vmem:[%s1650_s14 + $0x30] sm:$0xf] }
  0x2c   : > { %259 = vst [vmem:[%s232_s11 + $0x8] sm:$0xf] %v258_v2  ;;  %v268_v7 = vld [vmem:[%s1650_s14 + $0x38] sm:$0xf]  ;;  %v270_v8 = vld [vmem:[%s1650_s14 + $0x40] sm:$0xf] }
  0x2d   : > { %261 = vst [vmem:[%s232_s11 + $0xc] sm:$0xf] %v260_v3  ;;  %v272_v9 = vld [vmem:[%s1650_s14 + $0x48] sm:$0xf]  ;;  %v274_v10 = vld [vmem:[%s1650_s14 + $0x50] sm:$0xf] }
  0x2e   : > { %263 = vst [vmem:[%s232_s11 + $0x10] sm:$0xf] %v262_v4  ;;  %v276_v11 = vld [vmem:[%s1650_s14 + $0x58] sm:$0xf]  ;;  %v278_v12 = vld [vmem:[%s1650_s14 + $0x60] sm:$0xf] }
  0x2f   : > { %265 = vst [vmem:[%s232_s11 + $0x14] sm:$0xf] %v264_v5  ;;  %v280_v13 = vld [vmem:[%s1650_s14 + $0x68] sm:$0xf]  ;;  %v282_v14 = vld [vmem:[%s1650_s14 + $0x70] sm:$0xf] }
  0x30   : > { %267 = vst [vmem:[%s232_s11 + $0x18] sm:$0xf] %v266_v6  ;;  %v284_v15 = vld [vmem:[%s1650_s14 + $0x78] sm:$0xf] }
  0x31   : > { %269 = vst [vmem:[%s232_s11 + $0x1c] sm:$0xf] %v268_v7 }
  0x32   : > { %271 = vst [vmem:[%s232_s11 + $0x20] sm:$0xf] %v270_v8 }
  0x33   : > { %273 = vst [vmem:[%s232_s11 + $0x24] sm:$0xf] %v272_v9 }
  0x34   : > { %275 = vst [vmem:[%s232_s11 + $0x28] sm:$0xf] %v274_v10 }
  0x35   : > { %277 = vst [vmem:[%s232_s11 + $0x2c] sm:$0xf] %v276_v11 }
  0x36   : > { %279 = vst [vmem:[%s232_s11 + $0x30] sm:$0xf] %v278_v12 }
  0x37   : > { %281 = vst [vmem:[%s232_s11 + $0x34] sm:$0xf] %v280_v13 }
  0x38   : > { %283 = vst [vmem:[%s232_s11 + $0x38] sm:$0xf] %v282_v14 }
  0x39   : > { %285 = vst [vmem:[%s232_s11 + $0x3c] sm:$0xf] %v284_v15 }
  0x3a PF: > { %p1209_p0 = scmp.ge.s32.totalorder %s1509_s30, 1  ;;  %p367_p1 = scmp.lt.s32.totalorder %s1509_s30, 5 }
  0x3c   : > { %p368_p2 = pnand %p1209_p0, %p367_p1 }
  0x3d   : > { %s374_s9 = sand.u32 (!%p368_p2), 1, %s1485_s24   ;;  %s1871_s10 = sand.u32 (!%p368_p2), 1, %s1477_s22  }
  0x3e   : > { %371 = sbr.rel (%p368_p2) target bundleno = 690 (0x2b2), region = 81  ;;  %s1210_s13 = sshll.u32 (!%p368_p2), %s374_s9, 6 }
  0x3f   : > { %s1211_s7 = sshll.u32 (!%p368_p2), %s1871_s10, 7  ;;  %s1212_s8 = sshll.u32 (!%p368_p2), %s1493_s26, 4 }
  0x40   : > { %s1216_s12 = sshll.u32 (!%p368_p2), %s1497_s27, 4  ;;  %p420_p3 = scmp.lt.s32.totalorder (!%p368_p2), %s1212_s8, 31 }
  0x41   : > { %p432_p4 = scmp.lt.s32.totalorder (!%p368_p2), %s1216_s12, 31  ;;  %s1691_s25 = scalar_lea.vmem (!%p368_p2), [#allocation3], %s1210_s13 }
  0x42   : > { %s1693_s19 = scalar_lea.vmem (!%p368_p2), [#allocation4], %s1211_s7  ;;  %p1218_p5 = scmp.ne.s32.totalorder (!%p368_p2), %s1493_s26, 0 }
  0x43   : > { %s1904_s8 = smov (!%p420_p3, %s1212_s8), 31  ;;  %s1906_s12 = smov (!%p432_p4, %s1216_s12), 31 }
  0x44   : > { %s1213_s16 = sshll.u32 %s1904_s8, 3  ;;  %s1217_s9 = sshll.u32 %s1906_s12, 3 }
  0x45   : > { %s1679_s11 = scalar_lea.vmem %s1861_s1, %s1213_s16  ;;  %s1684_s24 = scalar_lea.vmem %s1862_s2, %s1213_s16 }
  0x46   : > { %s1689_s20 = scalar_lea.vmem %s1863_s3, %s1217_s9  ;;  %441 = sbr.rel (%p1218_p5) target bundleno = 92 (0x5c), region = 89 }
  0x4b   : > { %v1511_v16 = vmov 0.0  }
  0x4c   : > { %442 = vst [vmem:[#allocation2 + $0x30] sm:$0xff] %v1511_v16 }
  0x4d   : > { %443 = vst [vmem:[#allocation2] sm:$0xff] %v1511_v16 }
  0x4e   : > { %444 = vst [vmem:[#allocation2 + $0x58] sm:$0xff] %v1511_v16 }
  0x4f   : > { %445 = vst [vmem:[#allocation2 + $0x18] sm:$0xff] %v1511_v16 }
  0x50   : > { %446 = vst [vmem:[#allocation2 + $0x50] sm:$0xff] %v1511_v16 }
  0x51   : > { %447 = vst [vmem:[#allocation2 + $0x68] sm:$0xff] %v1511_v16 }
  0x52   : > { %448 = vst [vmem:[#allocation2 + $0x8] sm:$0xff] %v1511_v16 }
  0x53   : > { %449 = vst [vmem:[#allocation2 + $0x48] sm:$0xff] %v1511_v16 }
  0x54   : > { %450 = vst [vmem:[#allocation2 + $0x40] sm:$0xff] %v1511_v16 }
  0x55   : > { %451 = vst [vmem:[#allocation2 + $0x20] sm:$0xff] %v1511_v16 }
  0x56   : > { %452 = vst [vmem:[#allocation2 + $0x10] sm:$0xff] %v1511_v16 }
  0x57   : > { %453 = vst [vmem:[#allocation2 + $0x38] sm:$0xff] %v1511_v16 }
  0x58   : > { %454 = vst [vmem:[#allocation2 + $0x60] sm:$0xff] %v1511_v16 }
  0x59   : > { %455 = vst [vmem:[#allocation2 + $0x70] sm:$0xff] %v1511_v16 }
  0x5a   : > { %456 = vst [vmem:[#allocation2 + $0x78] sm:$0xff] %v1511_v16 }
  0x5b   : > { %457 = vst [vmem:[#allocation2 + $0x28] sm:$0xff] %v1511_v16 }
  0x5c PF: > { %v474_v17 = vld [vmem:[%s1864_s4] sm:$0xff]  ;;  %v603_v18 = vld [vmem:[%s1684_s24 + $0x70] sm:$0xff]  ;;  %vm475_vm0 = vcmask 64512   ;;  %v1512_v20 = vmov 0   ;;  %v604_v24 = vld [vmem:[%s1684_s24 + $0x78] sm:$0xff]  ;;  %p1267_p6 = scmp.ne.s32.totalorder %s1493_s26, 1 }
  0x5d   : > { %v458_v19 = vld [vmem:[%s1679_s11] sm:$0xff]  ;;  %1392 = vset.pattern.permute.xlu0 %v1512_v20  ;;  %539 = vmatpush.msra.mxu0 %v474_v17  ;;  %v468_v21 = vld [vmem:[%s1679_s11 + $0x50] sm:$0xff]  ;;  %v459_v25 = vld [vmem:[%s1679_s11 + $0x8] sm:$0xff] }
  0x5e   : > { %1283 = vmatpush.msra.mxu3 %v474_v17  ;;  %677 = vperm.xlu0 %1392, %v603_v18   ;;  %v601_v22 = vld [vmem:[%s1684_s24 + $0x60] sm:$0xff]  ;;  %v599_v23 = vld [vmem:[%s1684_s24 + $0x50] sm:$0xff]  ;;  %v469_v26 = vld [vmem:[%s1679_s11 + $0x58] sm:$0xff] }
  0x5f   : > { %1219 = vmatmul.msk.f32.vlgmr.msra.gmra.mxu0 %vm475_vm0, %v458_v19  ;;  %1229 = vmatmul.msk.f32.vlgmr.msra.gmra.mxu3 %vm475_vm0, %v468_v21  ;;  %v602_v27 = vld [vmem:[%s1684_s24 + $0x68] sm:$0xff]  ;;  %v600_v28 = vld [vmem:[%s1684_s24 + $0x58] sm:$0xff]  ;;  %v597_v29 = vld [vmem:[%s1684_s24 + $0x40] sm:$0xff] }
  0x60   : > { %1394 = vset.pattern.permute.xlu2 %v1512_v20  ;;  %1393 = vset.pattern.permute.xlu1 %v1512_v20  ;;  %v460_v30 = vld [vmem:[%s1679_s11 + $0x10] sm:$0xff]  ;;  %v470_v31 = vld [vmem:[%s1679_s11 + $0x60] sm:$0xff]  ;;  %v598_v32 = vld [vmem:[%s1684_s24 + $0x48] sm:$0xff] }
  0x61   : > { %667 = vperm.xlu1 %1393, %v601_v22   ;;  %657 = vperm.xlu2 %1394, %v599_v23   ;;  %v595_v33 = vld [vmem:[%s1684_s24 + $0x30] sm:$0xff]  ;;  %v596_v34 = vld [vmem:[%s1684_s24 + $0x38] sm:$0xff]  ;;  %v471_v36 = vld [vmem:[%s1679_s11 + $0x68] sm:$0xff] }
  0x62   : > { %v461_v35 = vld [vmem:[%s1679_s11 + $0x18] sm:$0xff]  ;;  %v594_v37 = vld [vmem:[%s1684_s24 + $0x28] sm:$0xff]  ;;  %v593_v38 = vld [vmem:[%s1684_s24 + $0x20] sm:$0xff] }
  0x63   : > { %v591_v39 = vld [vmem:[%s1684_s24 + $0x10] sm:$0xff]  ;;  %v462_v40 = vld [vmem:[%s1679_s11 + $0x20] sm:$0xff]  ;;  %v592_v42 = vld [vmem:[%s1684_s24 + $0x18] sm:$0xff] }
  0x64   : > { %v472_v41 = vld [vmem:[%s1679_s11 + $0x70] sm:$0xff]  ;;  %v589_v43 = vld [vmem:[%s1684_s24] sm:$0xff]  ;;  %v590_v44 = vld [vmem:[%s1684_s24 + $0x8] sm:$0xff] }
  0x65   : > { %v463_v45 = vld [vmem:[%s1679_s11 + $0x28] sm:$0xff]  ;;  %v473_v46 = vld [vmem:[%s1679_s11 + $0x78] sm:$0xff]  ;;  %v464_v47 = vld [vmem:[%s1679_s11 + $0x30] sm:$0xff] }
  0x66   : > { %682 = vperm.xlu0 %1392, %v604_v24   ;;  %v465_v48 = vld [vmem:[%s1679_s11 + $0x38] sm:$0xff]  ;;  %v466_v49 = vld [vmem:[%s1679_s11 + $0x40] sm:$0xff]  ;;  %v467_v50 = vld [vmem:[%s1679_s11 + $0x48] sm:$0xff] }
  0x67   : > { %1220 = vmatmul.msk.f32.gmra.mxu0 %vm475_vm0, %v459_v25  ;;  %1230 = vmatmul.msk.f32.gmra.mxu3 %vm475_vm0, %v469_v26 }
  0x69   : > { %672 = vperm.xlu1 %1393, %v602_v27   ;;  %662 = vperm.xlu2 %1394, %v600_v28  }
  0x6e   : > { %647 = vperm.xlu0 %1392, %v597_v29  }
  0x6f   : > { %1221 = vmatmul.msk.f32.gmra.mxu0 %vm475_vm0, %v460_v30  ;;  %1231 = vmatmul.msk.f32.gmra.mxu3 %vm475_vm0, %v470_v31 }
  0x71   : > { %652 = vperm.xlu1 %1393, %v598_v32   ;;  %637 = vperm.xlu2 %1394, %v595_v33  }
  0x76   : > { %642 = vperm.xlu0 %1392, %v596_v34  }
  0x77   : > { %1222 = vmatmul.msk.f32.gmra.mxu0 %vm475_vm0, %v461_v35  ;;  %1232 = vmatmul.msk.f32.gmra.mxu3 %vm475_vm0, %v471_v36 }
  0x79   : > { %632 = vperm.xlu2 %1394, %v594_v37   ;;  %627 = vperm.xlu1 %1393, %v593_v38  }
  0x7e   : > { %617 = vperm.xlu0 %1392, %v591_v39  }
  0x7f   : > { %1223 = vmatmul.msk.f32.gmra.mxu0 %vm475_vm0, %v462_v40  ;;  %1233 = vmatmul.msk.f32.gmra.mxu3 %vm475_vm0, %v472_v41 }
  0x81   : > { %622 = vperm.xlu1 %1393, %v592_v42   ;;  %607 = vperm.xlu2 %1394, %v589_v43   ;;  %v1277_v43 = vld [vmem:[%s1691_s25 + $0x18] sm:$0xff] }
  0x86   : > { %612 = vperm.xlu0 %1392, %v590_v44   ;;  %v1274_v44 = vld [vmem:[%s1691_s25] sm:$0xff] }
  0x87   : > { %1224 = vmatmul.msk.f32.gmra.mxu0 %vm475_vm0, %v463_v45  ;;  %1234 = vmatmul.msk.f32.gmra.mxu3 %vm475_vm0, %v473_v46  ;;  %v1281_v45 = vld [vmem:[%s1691_s25 + $0x38] sm:$0xff]  ;;  %v1278_v46 = vld [vmem:[%s1691_s25 + $0x20] sm:$0xff] }
  0x8f   : > { %1225 = vmatmul.msk.f32.gmra.mxu0 %vm475_vm0, %v464_v47  ;;  %v1275_v47 = vld [vmem:[%s1691_s25 + $0x8] sm:$0xff] }
  0x97   : > { %1226 = vmatmul.msk.f32.gmra.mxu0 %vm475_vm0, %v465_v48  ;;  %v1279_v48 = vld [vmem:[%s1691_s25 + $0x28] sm:$0xff] }
  0x9f   : > { %1227 = vmatmul.msk.f32.gmra.mxu0 %vm475_vm0, %v466_v49  ;;  %v1276_v49 = vld [vmem:[%s1691_s25 + $0x10] sm:$0xff] }
  0xa7   : > { %1228 = vmatmul.msk.f32.gmra.mxu0 %vm475_vm0, %v467_v50  ;;  %v1280_v50 = vld [vmem:[%s1691_s25 + $0x30] sm:$0xff] }
  0xbb   : > { %v658_v51 = vpop.permute.xlu2 %657 }
  0xc3   : > { %v663_v53 = vpop.permute.xlu2 %662 }
  0xcb   : > { %v638_v57 = vpop.permute.xlu2 %637 }
  0xd0   : > { %v678_v52 = vpop.permute.xlu0 %677 }
  0xd3   : > { %v633_v62 = vpop.permute.xlu2 %632  ;;  %v668_v10 = vpop.permute.xlu1 %667 }
  0xd8   : > { %v683_v54 = vpop.permute.xlu0 %682 }
  0xdb   : > { %v608_v3 = vpop.permute.xlu2 %607  ;;  %v673_v16 = vpop.permute.xlu1 %672 }
  0xdc   : > { %v541_v55 = vpop.f32.mrf.mxu0 }
  0xdd   : > { %v685_v5 = vmul.f32 %v608_v3, %v541_v55  ;;  %v715_v3 = vld [vmem:[#allocation2 + $0x78] sm:$0xff] }
  0xe0   : > { %v648_v56 = vpop.permute.xlu0 %647 }
  0xe2   : > { %v571_v58 = vpop.f32.mrf.mxu3 }
  0xe3   : > { %v695_v21 = vmul.f32 %v658_v51, %v571_v58  ;;  %v653_v26 = vpop.permute.xlu1 %652  ;;  %v701_v51 = vld [vmem:[#allocation2 + $0x30] sm:$0xff] }
  0xe4   : > { %v544_v59 = vpop.f32.mrf.mxu0 }
  0xe8   : > { %v643_v60 = vpop.permute.xlu0 %642 }
  0xea   : > { %v574_v61 = vpop.f32.mrf.mxu3 }
  0xeb   : > { %v696_v22 = vmul.f32 %v663_v53, %v574_v61  ;;  %v628_v28 = vpop.permute.xlu1 %627 }
  0xec   : > { %v547_v63 = vpop.f32.mrf.mxu0 }
  0xed   : > { %v738_v25 = vpack.c.bf16 %v696_v22, %v695_v21  ;;  %v706_v22 = vld [vmem:[#allocation2 + $0x68] sm:$0xff] }
  0xf0   : > { %v618_v0 = vpop.permute.xlu0 %617 }
  0xf1   : > { %v687_v41 = vmul.f32 %v618_v0, %v547_v63 }
  0xf2   : > { %v577_v1 = vpop.f32.mrf.mxu3 }
  0xf3   : > { %v697_v18 = vmul.f32 %v668_v10, %v577_v1  ;;  %v623_v37 = vpop.permute.xlu1 %622 }
  0xf4   : > { %v550_v2 = vpop.f32.mrf.mxu0 }
  0xf5   : > { %v688_v39 = vmul.f32 %v623_v37, %v550_v2 }
  0xf7   : > { %v734_v42 = vpack.c.bf16 %v688_v39, %v687_v41 }
  0xf8   : > { %v613_v4 = vpop.permute.xlu0 %612 }
  0xf9   : > { %v686_v6 = vmul.f32 %v613_v4, %v544_v59 }
  0xfa   : > { %v580_v7 = vpop.f32.mrf.mxu3 }
  0xfb   : > { %v733_v8 = vpack.c.bf16 %v686_v6, %v685_v5  ;;  %v698_v19 = vmul.f32 %v673_v16, %v580_v7  ;;  %v709_v5 = vld [vmem:[#allocation2 + $0x40] sm:$0xff]  ;;  %v704_v7 = vld [vmem:[#allocation2 + $0x18] sm:$0xff]  ;;  %v705_v16 = vld [vmem:[#allocation2 + $0x50] sm:$0xff] }
  0xfc   : > { %v553_v9 = vpop.f32.mrf.mxu0 }
  0xfd   : > { %v739_v23 = vpack.c.bf16 %v698_v19, %v697_v18  ;;  %v689_v38 = vmul.f32 %v628_v28, %v553_v9  ;;  %v716_v9 = vld [vmem:[#allocation2 + $0x28] sm:$0xff] }
 0x102   : > { %v583_v11 = vpop.f32.mrf.mxu3 }
 0x103   : > { %v699_v13 = vmul.f32 %v678_v52, %v583_v11 }
 0x104   : > { %v556_v12 = vpop.f32.mrf.mxu0 }
 0x105   : > { %v690_v35 = vmul.f32 %v633_v62, %v556_v12  ;;  %v703_v62 = vld [vmem:[#allocation2 + $0x58] sm:$0xff] }
 0x107   : > { %v735_v40 = vpack.c.bf16 %v690_v35, %v689_v38 }
 0x10a   : > { %v586_v14 = vpop.f32.mrf.mxu3 }
 0x10b   : > { %v700_v15 = vmul.f32 %v683_v54, %v586_v14  ;;  %v707_v54 = vld [vmem:[#allocation2 + $0x8] sm:$0xff]  ;;  %v710_v14 = vld [vmem:[#allocation2 + $0x20] sm:$0xff] }
 0x10c   : > { %v559_v17 = vpop.f32.mrf.mxu0 }
 0x10d   : > { %v740_v20 = vpack.c.bf16 %v700_v15, %v699_v13  ;;  %v691_v34 = vmul.f32 %v638_v57, %v559_v17 }
 0x10f   : > { %789 = vmatpush.bf16.msra.mxu1 %v740_v20  ;;  %1284 = vmatpush.bf16.msra.mxu2 %v740_v20 }
 0x110   : > { %1285 = vmatpush.bf16.msrb.mxu3 %v740_v20  ;;  %v711_v20 = vld [vmem:[#allocation2 + $0x10] sm:$0xff] }
 0x113   : > { %790 = vmatpush.bf16.msra.mxu1 %v739_v23  ;;  %1286 = vmatpush.bf16.msra.mxu2 %v739_v23 }
 0x114   : > { %1287 = vmatpush.bf16.msrb.mxu3 %v739_v23  ;;  %v562_v24 = vpop.f32.mrf.mxu0 }
 0x115   : > { %v692_v32 = vmul.f32 %v643_v60, %v562_v24  ;;  %v708_v60 = vld [vmem:[#allocation2 + $0x48] sm:$0xff] }
 0x117   : > { %791 = vmatpush.bf16.msra.mxu1 %v738_v25  ;;  %1288 = vmatpush.bf16.msra.mxu2 %v738_v25  ;;  %v736_v36 = vpack.c.bf16 %v692_v32, %v691_v34  ;;  %v714_v32 = vld [vmem:[#allocation2 + $0x70] sm:$0xff] }
 0x118   : > { %1289 = vmatpush.bf16.msrb.mxu3 %v738_v25 }
 0x11c   : > { %v565_v27 = vpop.f32.mrf.mxu0 }
 0x11d   : > { %v693_v30 = vmul.f32 %v648_v56, %v565_v27  ;;  %v702_v56 = vld [vmem:[#allocation2] sm:$0xff] }
 0x124   : > { %v568_v29 = vpop.f32.mrf.mxu0 }
 0x125   : > { %v694_v31 = vmul.f32 %v653_v26, %v568_v29  ;;  %v712_v26 = vld [vmem:[#allocation2 + $0x38] sm:$0xff]  ;;  %v713_v29 = vld [vmem:[#allocation2 + $0x60] sm:$0xff] }
 0x127   : > { %v737_v33 = vpack.c.bf16 %v694_v31, %v693_v30 }
 0x129   : > { %792 = vmatpush.bf16.msra.mxu1 %v737_v33  ;;  %1290 = vmatpush.bf16.msra.mxu2 %v737_v33 }
 0x12a   : > { %1291 = vmatpush.bf16.msrb.mxu3 %v737_v33 }
 0x12d   : > { %793 = vmatpush.bf16.msra.mxu1 %v736_v36  ;;  %1292 = vmatpush.bf16.msra.mxu2 %v736_v36 }
 0x12e   : > { %1293 = vmatpush.bf16.msrb.mxu3 %v736_v36 }
 0x131   : > { %794 = vmatpush.bf16.msra.mxu1 %v735_v40  ;;  %1294 = vmatpush.bf16.msra.mxu2 %v735_v40 }
 0x132   : > { %1295 = vmatpush.bf16.msrb.mxu3 %v735_v40 }
 0x135   : > { %795 = vmatpush.bf16.msra.mxu1 %v734_v42  ;;  %1296 = vmatpush.bf16.msra.mxu2 %v734_v42 }
 0x136   : > { %1297 = vmatpush.bf16.msrb.mxu3 %v734_v42 }
 0x139   : > { %796 = vmatpush.bf16.msra.mxu1 %v733_v8  ;;  %1298 = vmatpush.bf16.msra.mxu2 %v733_v8 }
 0x13a   : > { %1299 = vmatpush.bf16.msrb.mxu3 %v733_v8 }
 0x13c   : > { %812 = vmatmul.bf16.vlgmr.msra.gmra.mxu2 %v1277_v43  ;;  %797 = vmatmul.bf16.vlgmr.msra.gmra.mxu1 %v1274_v44 }
 0x13d   : > { %832 = vmatmul.bf16.vlgmr.msrb.gmra.mxu3 %v1281_v45 }
 0x14c   : > { %817 = vmatmul.bf16.gmra.mxu2 %v1278_v46  ;;  %802 = vmatmul.bf16.gmra.mxu1 %v1275_v47 }
 0x15c   : > { %822 = vmatmul.bf16.gmra.mxu2 %v1279_v48  ;;  %807 = vmatmul.bf16.gmra.mxu1 %v1276_v49 }
 0x16c   : > { %827 = vmatmul.bf16.gmra.mxu2 %v1280_v50 }
 0x1b9   : > { %v798_v52 = vpop.f32.mrf.mxu1 }
 0x1ba   : > { %v838_v53 = vadd.f32 %v798_v52, %v701_v51 }
 0x1bc   : > { %854 = vst [vmem:[#allocation2 + $0x30] sm:$0xff] %v838_v53 }
 0x1bf   : > { %v813_v55 = vpop.f32.mrf.mxu2 }
 0x1c0   : > { %v844_v57 = vadd.f32 %v813_v55, %v707_v54  ;;  %v833_v0 = vpop.f32.mrf.mxu3 }
 0x1c1   : > { %v800_v58 = vpop.f32.mrf.mxu1  ;;  %v852_v4 = vadd.f32 %v833_v0, %v715_v3 }
 0x1c2   : > { %860 = vst [vmem:[#allocation2 + $0x8] sm:$0xff] %v844_v57  ;;  %v839_v59 = vadd.f32 %v800_v58, %v702_v56 }
 0x1c3   : > { %868 = vst [vmem:[#allocation2 + $0x78] sm:$0xff] %v852_v4 }
 0x1c4   : > { %855 = vst [vmem:[#allocation2] sm:$0xff] %v839_v59 }
 0x1c7   : > { %v815_v61 = vpop.f32.mrf.mxu2 }
 0x1c8   : > { %v845_v63 = vadd.f32 %v815_v61, %v708_v60  ;;  %v835_v10 = vpop.f32.mrf.mxu3 }
 0x1c9   : > { %v803_v1 = vpop.f32.mrf.mxu1  ;;  %v853_v12 = vadd.f32 %v835_v10, %v716_v9 }
 0x1ca   : > { %861 = vst [vmem:[#allocation2 + $0x48] sm:$0xff] %v845_v63  ;;  %v840_v2 = vadd.f32 %v803_v1, %v703_v62 }
 0x1cb   : > { %869 = vst [vmem:[#allocation2 + $0x28] sm:$0xff] %v853_v12 }
 0x1cc   : > { %856 = vst [vmem:[#allocation2 + $0x58] sm:$0xff] %v840_v2 }
 0x1cf   : > { %v818_v6 = vpop.f32.mrf.mxu2 }
 0x1d0   : > { %v846_v8 = vadd.f32 %v818_v6, %v709_v5 }
 0x1d1   : > { %v805_v11 = vpop.f32.mrf.mxu1 }
 0x1d2   : > { %862 = vst [vmem:[#allocation2 + $0x40] sm:$0xff] %v846_v8  ;;  %v841_v13 = vadd.f32 %v805_v11, %v704_v7 }
 0x1d4   : > { %857 = vst [vmem:[#allocation2 + $0x18] sm:$0xff] %v841_v13 }
 0x1d7   : > { %v820_v15 = vpop.f32.mrf.mxu2 }
 0x1d8   : > { %v847_v17 = vadd.f32 %v820_v15, %v710_v14 }
 0x1d9   : > { %v808_v18 = vpop.f32.mrf.mxu1 }
 0x1da   : > { %863 = vst [vmem:[#allocation2 + $0x20] sm:$0xff] %v847_v17  ;;  %v842_v19 = vadd.f32 %v808_v18, %v705_v16 }
 0x1dc   : > { %858 = vst [vmem:[#allocation2 + $0x50] sm:$0xff] %v842_v19 }
 0x1df   : > { %v823_v21 = vpop.f32.mrf.mxu2 }
 0x1e0   : > { %v848_v23 = vadd.f32 %v823_v21, %v711_v20 }
 0x1e1   : > { %v810_v24 = vpop.f32.mrf.mxu1 }
 0x1e2   : > { %864 = vst [vmem:[#allocation2 + $0x10] sm:$0xff] %v848_v23  ;;  %v843_v25 = vadd.f32 %v810_v24, %v706_v22 }
 0x1e4   : > { %859 = vst [vmem:[#allocation2 + $0x68] sm:$0xff] %v843_v25 }
 0x1e7   : > { %v825_v27 = vpop.f32.mrf.mxu2 }
 0x1e8   : > { %v849_v28 = vadd.f32 %v825_v27, %v712_v26 }
 0x1ea   : > { %865 = vst [vmem:[#allocation2 + $0x38] sm:$0xff] %v849_v28 }
 0x1ef   : > { %v828_v30 = vpop.f32.mrf.mxu2 }
 0x1f0   : > { %v850_v31 = vadd.f32 %v828_v30, %v713_v29 }
 0x1f2   : > { %866 = vst [vmem:[#allocation2 + $0x60] sm:$0xff] %v850_v31 }
 0x1f6   : > { %873 = sbr.rel (%p1267_p6) target bundleno = 674 (0x2a2), region = 93 }
 0x1f7   : > { %v830_v33 = vpop.f32.mrf.mxu2 }
 0x1f8   : > { %v851_v34 = vadd.f32 %v830_v33, %v714_v32 }
 0x1fa   : > { %867 = vst [vmem:[#allocation2 + $0x70] sm:$0xff] %v851_v34 }
 0x1fb   : > { %v894_v35 = vld [vmem:[%s1689_s20 + $0x20] sm:$0xff]  ;;  %v892_v36 = vld [vmem:[%s1689_s20 + $0x10] sm:$0xff]  ;;  %v1513_v38 = vmov 0   ;;  %v895_v39 = vld [vmem:[%s1689_s20 + $0x28] sm:$0xff] }
 0x1fc   : > { %v890_v37 = vld [vmem:[%s1689_s20] sm:$0xff]  ;;  %1397 = vset.pattern.permute.xlu2 %v1513_v38  ;;  %1396 = vset.pattern.permute.xlu1 %v1513_v38  ;;  %v893_v40 = vld [vmem:[%s1689_s20 + $0x18] sm:$0xff]  ;;  %v891_v41 = vld [vmem:[%s1689_s20 + $0x8] sm:$0xff] }
 0x1fd   : > { %1395 = vset.pattern.permute.xlu0 %v1513_v38  ;;  %928 = vperm.xlu2 %1397, %v894_v35   ;;  %v898_v42 = vld [vmem:[%s1689_s20 + $0x40] sm:$0xff]  ;;  %v897_v43 = vld [vmem:[%s1689_s20 + $0x38] sm:$0xff]  ;;  %v896_v44 = vld [vmem:[%s1689_s20 + $0x30] sm:$0xff] }
 0x1fe   : > { %918 = vperm.xlu1 %1396, %v892_v36   ;;  %908 = vperm.xlu0 %1395, %v890_v37   ;;  %v901_v45 = vld [vmem:[%s1689_s20 + $0x58] sm:$0xff]  ;;  %v900_v46 = vld [vmem:[%s1689_s20 + $0x50] sm:$0xff]  ;;  %v899_v47 = vld [vmem:[%s1689_s20 + $0x48] sm:$0xff] }
 0x1ff   : > { %v904_v48 = vld [vmem:[%s1689_s20 + $0x70] sm:$0xff]  ;;  %v903_v49 = vld [vmem:[%s1689_s20 + $0x68] sm:$0xff]  ;;  %v902_v50 = vld [vmem:[%s1689_s20 + $0x60] sm:$0xff] }
 0x200   : > { %v905_v51 = vld [vmem:[%s1689_s20 + $0x78] sm:$0xff]  ;;  %v878_v52 = vld [vmem:[#allocation2 + $0x50] sm:$0xff]  ;;  %v1775_v54 = vld [vmem:[%s1865_s5] ss:$0 sm:$0xff] }
 0x201   : > { %v879_v58 = vld [vmem:[#allocation2 + $0x68] sm:$0xff]  ;;  %v882_v0 = vld [vmem:[#allocation2 + $0x40] sm:$0xff]  ;;  %v885_v6 = vld [vmem:[#allocation2 + $0x38] sm:$0xff] }
 0x202   : > { %v876_v8 = vld [vmem:[#allocation2 + $0x58] sm:$0xff]  ;;  %v874_v9 = vld [vmem:[#allocation2 + $0x30] sm:$0xff]  ;;  %v875_v25 = vld [vmem:[#allocation2] sm:$0xff] }
 0x203   : > { %v888_v22 = vld [vmem:[#allocation2 + $0x78] sm:$0xff] }
 0x204   : > { %v877_v24 = vld [vmem:[#allocation2 + $0x18] sm:$0xff] }
 0x205   : > { %933 = vperm.xlu2 %1397, %v895_v39  }
 0x206   : > { %923 = vperm.xlu1 %1396, %v893_v40   ;;  %913 = vperm.xlu0 %1395, %v891_v41   ;;  %v881_v41 = vld [vmem:[#allocation2 + $0x48] sm:$0xff] }
 0x20d   : > { %948 = vperm.xlu2 %1397, %v898_v42   ;;  %v880_v42 = vld [vmem:[#allocation2 + $0x8] sm:$0xff] }
 0x20e   : > { %943 = vperm.xlu1 %1396, %v897_v43   ;;  %938 = vperm.xlu0 %1395, %v896_v44  }
 0x215   : > { %963 = vperm.xlu2 %1397, %v901_v45  }
 0x216   : > { %958 = vperm.xlu1 %1396, %v900_v46   ;;  %953 = vperm.xlu0 %1395, %v899_v47  }
 0x21d   : > { %978 = vperm.xlu2 %1397, %v904_v48  }
 0x21e   : > { %973 = vperm.xlu1 %1396, %v903_v49   ;;  %968 = vperm.xlu0 %1395, %v902_v50  }
 0x226   : > { %983 = vperm.xlu0 %1395, %v905_v51  }
 0x257   : > { %v929_v53 = vpop.permute.xlu2 %928 }
 0x258   : > { %v990_v55 = vmul.f32 %v929_v53, %v878_v52  ;;  %v884_v53 = vld [vmem:[#allocation2 + $0x10] sm:$0xff] }
 0x25a   : > { %v1008_v56 = vadd.f32 %v1775_v54, %v990_v55  ;;  %v883_v55 = vld [vmem:[#allocation2 + $0x20] sm:$0xff] }
 0x25c   : > { %v1024_v57 = vmul.f32 0.01, %v1008_v56 }
 0x25e   : > { %v1040_v59 = vmax.f32 %v1008_v56, %v1024_v57 }
 0x25f   : > { %v934_v60 = vpop.permute.xlu2 %933 }
 0x260   : > { %1056 = vst [vmem:[%s1693_s19 + $0x20] sm:$0xff] %v1040_v59  ;;  %v991_v61 = vmul.f32 %v934_v60, %v879_v58 }
 0x262   : > { %v1009_v62 = vadd.f32 %v1775_v54, %v991_v61 }
 0x264   : > { %v1025_v63 = vmul.f32 0.01, %v1009_v62 }
 0x266   : > { %v1041_v1 = vmax.f32 %v1009_v62, %v1025_v63 }
 0x267   : > { %v949_v2 = vpop.permute.xlu2 %948 }
 0x268   : > { %1057 = vst [vmem:[%s1693_s19 + $0x28] sm:$0xff] %v1041_v1  ;;  %v994_v3 = vmul.f32 %v949_v2, %v882_v0  ;;  %v887_v2 = vld [vmem:[#allocation2 + $0x70] sm:$0xff] }
 0x26a   : > { %v1012_v4 = vadd.f32 %v1775_v54, %v994_v3  ;;  %v886_v3 = vld [vmem:[#allocation2 + $0x60] sm:$0xff] }
 0x26c   : > { %v1028_v5 = vmul.f32 0.01, %v1012_v4 }
 0x26e   : > { %v1044_v7 = vmax.f32 %v1012_v4, %v1028_v5 }
 0x26f   : > { %v964_v10 = vpop.permute.xlu2 %963 }
 0x270   : > { %1060 = vst [vmem:[%s1693_s19 + $0x40] sm:$0xff] %v1044_v7  ;;  %v997_v11 = vmul.f32 %v964_v10, %v885_v6  ;;  %v919_v12 = vpop.permute.xlu1 %918  ;;  %v909_v13 = vpop.permute.xlu0 %908 }
 0x271   : > { %v988_v14 = vmul.f32 %v919_v12, %v876_v8  ;;  %v986_v15 = vmul.f32 %v909_v13, %v874_v9 }
 0x272   : > { %v1015_v16 = vadd.f32 %v1775_v54, %v997_v11 }
 0x273   : > { %v1006_v17 = vadd.f32 %v1775_v54, %v988_v14  ;;  %v1004_v18 = vadd.f32 %v1775_v54, %v986_v15  ;;  %v889_v14 = vld [vmem:[#allocation2 + $0x28] sm:$0xff] }
 0x274   : > { %v1031_v19 = vmul.f32 0.01, %v1015_v16 }
 0x275   : > { %v1022_v20 = vmul.f32 0.01, %v1006_v17  ;;  %v1020_v21 = vmul.f32 0.01, %v1004_v18 }
 0x276   : > { %v1047_v23 = vmax.f32 %v1015_v16, %v1031_v19 }
 0x277   : > { %v1038_v26 = vmax.f32 %v1006_v17, %v1022_v20  ;;  %v1036_v27 = vmax.f32 %v1004_v18, %v1020_v21  ;;  %v979_v28 = vpop.permute.xlu2 %978 }
 0x278   : > { %1063 = vst [vmem:[%s1693_s19 + $0x58] sm:$0xff] %v1047_v23  ;;  %v1000_v29 = vmul.f32 %v979_v28, %v888_v22  ;;  %v924_v30 = vpop.permute.xlu1 %923  ;;  %v914_v31 = vpop.permute.xlu0 %913 }
 0x279   : > { %1054 = vst [vmem:[%s1693_s19 + $0x10] sm:$0xff] %v1038_v26  ;;  %v989_v32 = vmul.f32 %v924_v30, %v877_v24  ;;  %v987_v33 = vmul.f32 %v914_v31, %v875_v25 }
 0x27a   : > { %1052 = vst [vmem:[%s1693_s19] sm:$0xff] %v1036_v27  ;;  %v1018_v34 = vadd.f32 %v1775_v54, %v1000_v29 }
 0x27b   : > { %v1007_v35 = vadd.f32 %v1775_v54, %v989_v32  ;;  %v1005_v36 = vadd.f32 %v1775_v54, %v987_v33 }
 0x27c   : > { %v1034_v37 = vmul.f32 0.01, %v1018_v34 }
 0x27d   : > { %v1023_v38 = vmul.f32 0.01, %v1007_v35  ;;  %v1021_v39 = vmul.f32 0.01, %v1005_v36 }
 0x27e   : > { %v1050_v40 = vmax.f32 %v1018_v34, %v1034_v37 }
 0x27f   : > { %v1039_v43 = vmax.f32 %v1007_v35, %v1023_v38  ;;  %v1037_v44 = vmax.f32 %v1005_v36, %v1021_v39 }
 0x280   : > { %1066 = vst [vmem:[%s1693_s19 + $0x70] sm:$0xff] %v1050_v40  ;;  %v944_v45 = vpop.permute.xlu1 %943  ;;  %v939_v46 = vpop.permute.xlu0 %938 }
 0x281   : > { %1055 = vst [vmem:[%s1693_s19 + $0x18] sm:$0xff] %v1039_v43  ;;  %v993_v47 = vmul.f32 %v944_v45, %v881_v41  ;;  %v992_v48 = vmul.f32 %v939_v46, %v880_v42 }
 0x282   : > { %1053 = vst [vmem:[%s1693_s19 + $0x8] sm:$0xff] %v1037_v44 }
 0x283   : > { %v1011_v49 = vadd.f32 %v1775_v54, %v993_v47  ;;  %v1010_v50 = vadd.f32 %v1775_v54, %v992_v48 }
 0x285   : > { %v1027_v51 = vmul.f32 0.01, %v1011_v49  ;;  %v1026_v52 = vmul.f32 0.01, %v1010_v50 }
 0x287   : > { %v1043_v56 = vmax.f32 %v1011_v49, %v1027_v51  ;;  %v1042_v57 = vmax.f32 %v1010_v50, %v1026_v52 }
 0x288   : > { %v959_v58 = vpop.permute.xlu1 %958  ;;  %v954_v59 = vpop.permute.xlu0 %953 }
 0x289   : > { %1059 = vst [vmem:[%s1693_s19 + $0x38] sm:$0xff] %v1043_v56  ;;  %v996_v60 = vmul.f32 %v959_v58, %v884_v53  ;;  %v995_v61 = vmul.f32 %v954_v59, %v883_v55 }
 0x28a   : > { %1058 = vst [vmem:[%s1693_s19 + $0x30] sm:$0xff] %v1042_v57 }
 0x28b   : > { %v1014_v62 = vadd.f32 %v1775_v54, %v996_v60  ;;  %v1013_v63 = vadd.f32 %v1775_v54, %v995_v61 }
 0x28d   : > { %v1030_v0 = vmul.f32 0.01, %v1014_v62  ;;  %v1029_v1 = vmul.f32 0.01, %v1013_v63 }
 0x28f   : > { %v1046_v4 = vmax.f32 %v1014_v62, %v1030_v0  ;;  %v1045_v5 = vmax.f32 %v1013_v63, %v1029_v1 }
 0x290   : > { %v974_v6 = vpop.permute.xlu1 %973  ;;  %v969_v7 = vpop.permute.xlu0 %968 }
 0x291   : > { %1062 = vst [vmem:[%s1693_s19 + $0x50] sm:$0xff] %v1046_v4  ;;  %v999_v8 = vmul.f32 %v974_v6, %v887_v2  ;;  %v998_v9 = vmul.f32 %v969_v7, %v886_v3 }
 0x292   : > { %1061 = vst [vmem:[%s1693_s19 + $0x48] sm:$0xff] %v1045_v5 }
 0x293   : > { %v1017_v10 = vadd.f32 %v1775_v54, %v999_v8  ;;  %v1016_v11 = vadd.f32 %v1775_v54, %v998_v9 }
 0x295   : > { %v1033_v12 = vmul.f32 0.01, %v1017_v10  ;;  %v1032_v13 = vmul.f32 0.01, %v1016_v11 }
 0x297   : > { %v1049_v15 = vmax.f32 %v1017_v10, %v1033_v12  ;;  %v1048_v16 = vmax.f32 %v1016_v11, %v1032_v13 }
 0x298   : > { %v984_v17 = vpop.permute.xlu0 %983 }
 0x299   : > { %1065 = vst [vmem:[%s1693_s19 + $0x68] sm:$0xff] %v1049_v15  ;;  %v1001_v18 = vmul.f32 %v984_v17, %v889_v14 }
 0x29a   : > { %1064 = vst [vmem:[%s1693_s19 + $0x60] sm:$0xff] %v1048_v16 }
 0x29b   : > { %v1019_v19 = vadd.f32 %v1775_v54, %v1001_v18 }
 0x29d   : > { %v1035_v20 = vmul.f32 0.01, %v1019_v19 }
 0x29f   : > { %v1051_v21 = vmax.f32 %v1019_v19, %v1035_v20 }
 0x2a1   : > { %1067 = vst [vmem:[%s1693_s19 + $0x78] sm:$0xff] %v1051_v21 }
 0x2a2 PF: > { %s1282_s29 = sshll.u32 %s1497_s27, 7  ;;  %s1081_s7 = sshll.u32 %s1693_s19, 4  ;;  %s1082_s7 = int_to_ptr.vmem [resolvable:$true] %s1081_s7 }
 0x2a3   : > { %s1080_s13 = scalar_lea.hbm %s1866_s6, %s1282_s29  ;;  %s1885_s12 = sand.u32 1, %s1477_s22  }
 0x2a4   : > { %s1083_s8 = sshll.u32 %s1080_s13, 4  ;;  %s1069_s16 = scalar_lea.sflag [#allocation5], %s1885_s12  ;;  %s1084_s8 = int_to_ptr.hbm [resolvable:$true] %s1083_s8 }
 0x2a5   : > { %s1413_s17 = sshra.s32 %s1084_s8, 4  ;;  %s1419_s27 = scalar_lea.hbm %s1866_s6, 256  ;;  %s1414_s17 = int_to_ptr.hbm [resolvable:$true] %s1413_s17 }
 0x2a6   : > { %s1415_s14 = scalar_lea.hbm %s1414_s17, 128  ;;  %p1420_p11 = scmp.lt.s32.totalorder %s1414_s17, %s1866_s6 }
 0x2a7   : > { %p1416_p8 = scmp.ne.s32.totalorder %s1414_s17, %s1415_s14  ;;  %p1421_p13 = scmp.lt.s32.totalorder %s1419_s27, %s1415_s14 }
 0x2a9   : > { %p1417_p9 = pnand %p1416_p8, %p1623_p7  ;;  %p1422_p0 = por %p1421_p13, %p1420_p11 }
 0x2ab   : > { %p1418_p10 = pneg %p1417_p9 }
 0x2ad   : > { %p1423_p1 = pnand %p1422_p0, %p1418_p10 }
 0x2af   : > { %1426 = shalt.err (!%p1423_p1)
}
 0x2b0   : > { %s1514_s19 = smov 128   ;;  %s1515_s28 = smov 8  }
 0x2b1   : > { %1300 = dma.vmem_to_hbm [thread:$0]  (%p1623_p7), %s1082_s7, 2048, %s1084_s8, %s1069_s16, %s1514_s19, %s1514_s19, %s1515_s28  }
 0x2b2 PF: > { %p1306_p2 = scmp.ge.s32.totalorder %s1509_s30, 2  ;;  %s1098_s25 = sand.u32 1, %s1473_s21  }
 0x2b3   : > { %s1099_s26 = scalar_lea.sflag [#allocation5], %s1098_s25 }
 0x2b4   : > { %p1303_p3 = pnand %p1306_p2, %p1631_p12 }
 0x2b6   : > { %p1304_p4 = pneg %p1303_p3 }
 0x2b8   : > { %1468 = dma.done.wait (%p1304_p4), %s1099_s26, 2048  }
 0x2b9   : > { %1470 = vsyncadd (%p1304_p4), %s1099_s26, 4294965248  ;;  %s19_s30 = sadd.s32 1, %s1509_s30   ;;  %s1886_s29 = sld [smem:[#allocation12_spill]] }
 0x2ba   : > { %p16_p5 = scmp.ge.s32.totalorder %s19_s30, 6   ;;  %s1887_s24 = sld [smem:[#allocation7_spill]] }
 0x2bb   : > { %s1888_s25 = sld [smem:[#allocation13_spill]]  ;;  %s1893_s21 = smov %s1477_s22 }
 0x2bc   : > { %s1889_s26 = sld [smem:[#allocation8_spill]]  ;;  %s1894_s22 = smov %s1481_s23 }
 0x2bd   : > { %s1890_s27 = sld [smem:[#allocation9_spill]] }
 0x2be   : > { %s1891_s28 = sld [smem:[#allocation10_spill]] }
 0x2bf   : > { %s1892_s15 = sld [smem:[#allocation11_spill]]  ;;  %s1895_s23 = smov %s1886_s29 }
 0x2c1   :  { %18 = sbr.rel (!%p16_p5) target bundleno = 8 (0x8), region = 142 }
 0x2c5   : > { %s1896_s29 = smov %s1892_s15 }
 0x2c6   :  { %1105 = vsyncpa [#allocation5], 1 }
 0x2c7   :  { %1107 = vsyncpa [#allocation5 + $0x1], 1 }

</bundles_post_ra>
